<compile_context>
chip_gen: v7x
topology: tpu7x:2x2x1
jax: 0.10.0
libtpu: 0.0.40
codegen_flags: <defaults>
</compile_context>

<pallas_src>
import functools

import jax
import jax.numpy as jnp
from jax.experimental import pallas as pl
from jax.experimental.pallas import tpu as pltpu


# ---------------------------------------------------------------------------
# Kernel
# ---------------------------------------------------------------------------
@functools.lru_cache(maxsize=None)
def _make_mlp_kernel(num_linear, mxu_dtype):
    """Kernel over one row tile: x @ W1 + b1 -> tanh -> ... -> @ Wn + bn."""

    def kernel(*refs):
        x_ref = refs[0]
        o_ref = refs[-1]
        wb = refs[1:-1]                       # (w1, b1, w2, b2, ...)
        h = x_ref[...]
        for l in range(num_linear):
            w_ref = wb[2 * l]
            b_ref = wb[2 * l + 1]
            # MXU matmul (bf16 or f32 operands), always f32 accumulation.
            h = jnp.dot(h.astype(mxu_dtype), w_ref[...],
                        preferred_element_type=jnp.float32)
            h = h + b_ref[...]                # (tm, D) + (1, D), f32 on VPU
            if l < num_linear - 1:
                # TODO(synk): Dropout(p=0.05) is identity in eval mode; train
                # mode would need pltpu.prng_seed/prng_random_bits masking.
                h = jnp.tanh(h)               # EUP
        o_ref[...] = h.astype(o_ref.dtype)

    return kernel


# ---------------------------------------------------------------------------
# Setup-time parameter packing (hoisted out of the forward path)
# ---------------------------------------------------------------------------
def _pack_factor(dims):
    """Largest p in {8,4,2,1} making every packed width a multiple of 128."""
    for p in (8, 4, 2):
        if all((p * d) % 128 == 0 for d in dims):
            return p
    return 1


def pack_mlp_params(weights, biases, mxu_dtype=jnp.float32):
    """Precompute lane-packed (block-diagonal) parameters ONCE at setup time.

    weights: list of (d_in, d_out) arrays, biases: list of (d_out,) arrays.
    p logical rows are lane-packed per physical row; kron(eye(p), W) keeps the
    math identical while making every packed width a multiple of 128 lanes.
    """
    dims = set()
    for w in weights:
        dims.add(int(w.shape[0]))
        dims.add(int(w.shape[1]))
    p = _pack_factor(sorted(dims))

    packed_w, packed_b = [], []
    for w, b in zip(weights, biases):
        if p > 1:
            eye = jnp.eye(p, dtype=w.dtype)
            wk = jnp.kron(eye, w)                               # block-diagonal
            bk = jnp.tile(b, p).reshape(1, p * b.shape[0])
        else:
            wk = w
            bk = b.reshape(1, -1)
        packed_w.append(jnp.asarray(wk, mxu_dtype))             # MXU operand dtype
        packed_b.append(jnp.asarray(bk, jnp.float32))           # bias stays f32
    return dict(
        p=p,
        mxu_dtype=mxu_dtype,
        weights=tuple(packed_w),
        biases=tuple(packed_b),
        raw_weights=tuple(weights),
        raw_biases=tuple(biases),
    )


# ---------------------------------------------------------------------------
# Tiling heuristics
# ---------------------------------------------------------------------------
def _num_tensorcores():
    """Best-effort TensorCores-per-chip (2 on v7x, 1 on v5e/v6e); default 1."""
    try:
        info = pltpu.get_tpu_info()
        for attr in ("num_cores", "num_tensorcores", "tensorcores_per_chip",
                     "cores_per_chip", "core_count"):
            v = getattr(info, attr, None)
            if isinstance(v, int) and v > 0:
                return v
    except Exception:
        pass
    return 1


def _choose_row_tile(m, target, bytes_per_packed_row, resident_bytes):
    """Row tile in packed rows: multiple of 8 (or == m), VMEM-capped.

    Split a single full tile across two TensorCores only when the chip has
    >= 2 cores AND each shard still gets >= 128 packed rows of work.
    """
    if m <= 8:
        return m
    budget = max(12 * 1024 * 1024 - resident_bytes, 2 * 1024 * 1024)
    cap = max(8, budget // max(int(bytes_per_packed_row), 1))
    tm = int(min(target, m, cap))
    tm = max(8, (tm // 8) * 8)
    if tm >= m and m >= 256 and _num_tensorcores() >= 2:
        tm = max(128, (((m + 1) // 2) // 8) * 8)
    return tm


# ---------------------------------------------------------------------------
# Forward
# ---------------------------------------------------------------------------
def mlp_forward(x, params, *, rows_per_tile=512):
    """x: [..., f_in] -> [..., f_out]   (eval-mode MLP: Linear->Tanh->...->Linear)."""
    weights, biases = params["weights"], params["biases"]
    raw_w, raw_b = params["raw_weights"], params["raw_biases"]
    p = params["p"]
    mxu_dtype = params["mxu_dtype"]
    num_linear = len(weights)

    f_in = raw_w[0].shape[0]
    f_out = raw_w[-1].shape[1]
    lead = x.shape[:-1]

    x2d = x.reshape(-1, f_in)
    n = x2d.shape[0]
    n_full = (n // p) * p                       # rows handled by the packed kernel

    outs = []
    if n_full > 0:
        # Lane-pack p rows per physical row (free row-major reshape).
        xk = x2d[:n_full].reshape(n_full // p, p * f_in).astype(mxu_dtype)
        m, kin = xk.shape
        kout = weights[-1].shape[1]

        # Rough per-packed-row VMEM use: double-buffered x/out tiles + f32
        # intermediates between the dots; weights are tm-independent.
        in_itm = jnp.dtype(mxu_dtype).itemsize
        out_itm = jnp.dtype(x.dtype).itemsize
        inter_w = sum(int(w.shape[1]) for w in weights)
        bytes_per_row = 2 * kin * in_itm + 2 * kout * out_itm + 4 * inter_w
        resident = 2 * sum(int(w.size) * w.dtype.itemsize for w in weights)

        tm = _choose_row_tile(m, rows_per_tile, bytes_per_row, resident)
        grid = (pl.cdiv(m, tm),)

        in_specs = [pl.BlockSpec((tm, kin), lambda i: (i, 0))]      # x row tile
        for w, b in zip(weights, biases):
            in_specs.append(pl.BlockSpec(w.shape, lambda i: (0, 0)))  # VMEM-resident W
            in_specs.append(pl.BlockSpec(b.shape, lambda i: (0, 0)))  # VMEM-resident b

        flat_wb = [a for wb in zip(weights, biases) for a in wb]

        outk = pl.pallas_call(
            _make_mlp_kernel(num_linear, mxu_dtype),
            out_shape=jax.ShapeDtypeStruct((m, kout), x.dtype),
            grid_spec=pltpu.PrefetchScalarGridSpec(
                num_scalar_prefetch=0,
                grid=grid,
                in_specs=in_specs,
                out_specs=pl.BlockSpec((tm, kout), lambda i: (i, 0)),
            ),
            compiler_params=pltpu.CompilerParams(
                dimension_semantics=("parallel",)),
        )(xk, *flat_wb)
        outs.append(outk.reshape(n_full, f_out))

    if n_full < n:
        # Ragged tail (< p rows): tiny pure-JAX path; avoids padding / copying
        # the whole input through HBM just to round up to the pack factor.
        h = x2d[n_full:].astype(jnp.float32)
        for l, (w, b) in enumerate(zip(raw_w, raw_b)):
            h = h @ w.astype(jnp.float32) + b.astype(jnp.float32)
            if l < num_linear - 1:
                h = jnp.tanh(h)
        outs.append(h.astype(x.dtype))

    out2d = outs[0] if len(outs) == 1 else jnp.concatenate(outs, axis=0)
    return out2d.reshape(*lead, f_out)


# ---------------------------------------------------------------------------
# Demo / self-check
# ---------------------------------------------------------------------------
def init_linear(key, fan_in, fan_out, dtype=jnp.float32):
    """torch.nn.Linear default init: U[-1/sqrt(fan_in), 1/sqrt(fan_in)]."""
    kw, kb = jax.random.split(key)
    bound = 1.0 / (fan_in ** 0.5)
    w = jax.random.uniform(kw, (fan_in, fan_out), dtype, minval=-bound, maxval=bound)
    b = jax.random.uniform(kb, (fan_out,), dtype, minval=-bound, maxval=bound)
    return w, b


if __name__ == "__main__":
    # MLP(f_in=16, f_out=16, hidden_dim=32, hidden_layers=2, activation='tanh')
    # input x: (batch=2, seq=128, f_in=16) -> 256 rows, lane-packed (p=8) into
    # 32 physical rows processed by a single grid step.
    f_in, hidden, f_out = 16, 32, 16
    key = jax.random.PRNGKey(0)
    k_x, k_l1, k_l2 = jax.random.split(key, 3)

    x = jax.random.normal(k_x, (2, 128, f_in), dtype=jnp.float32)
    w1, b1 = init_linear(k_l1, f_in, hidden)
    w2, b2 = init_linear(k_l2, hidden, f_out)
    weights, biases = [w1, w2], [b1, b2]

    # Packing is done ONCE at setup time (hoisted out of the forward path).
    params_f32 = pack_mlp_params(weights, biases, mxu_dtype=jnp.float32)
    params_bf16 = pack_mlp_params(weights, biases, mxu_dtype=jnp.bfloat16)

    out_f32 = jax.block_until_ready(mlp_forward(x, params_f32))
    out_bf16 = jax.block_until_ready(mlp_forward(x, params_bf16))

    # Pure-JAX reference (eval mode: dropout = identity), highest precision.
    h_ref = jnp.dot(x.reshape(-1, f_in), w1, precision="highest") + b1
    ref = (jnp.dot(jnp.tanh(h_ref), w2, precision="highest") + b2)
    ref = ref.reshape(2, 128, f_out)

    assert out_f32.shape == (2, 128, f_out)
    assert out_bf16.shape == (2, 128, f_out)
    # Tolerances account for MXU pass precision vs the HIGHEST-precision ref.
    assert jnp.allclose(out_f32, ref, atol=1e-2, rtol=1e-2)
    assert jnp.allclose(out_bf16, ref, atol=5e-2, rtol=5e-2)

    print("KERNEL_OK")
</pallas_src>

<mosaic_0001>
module attributes {stable_mosaic.version = 11 : i64} {
  func.func @kernel(%arg0: i32, %arg1: memref<32x128xf32, #tpu.memory_space<vmem>>, %arg2: memref<128x256xf32, #tpu.memory_space<vmem>>, %arg3: memref<1x256xf32, #tpu.memory_space<vmem>>, %arg4: memref<256x128xf32, #tpu.memory_space<vmem>>, %arg5: memref<1x128xf32, #tpu.memory_space<vmem>>, %arg6: memref<32x128xf32, #tpu.memory_space<vmem>>) attributes {dimension_semantics = [#tpu.dimension_semantics<parallel>], iteration_bounds = array<i64: 1>, scalar_prefetch = 0 : i64, scratch_operands = 0 : i64, tpu.core_type = #tpu.core_type<tc>, window_params = [{transform_indices = @transform_0, window_bounds = array<i64: 32, 128>}, {pipeline_mode = #tpu.pipeline_mode<synchronous>, transform_indices = @transform_1, window_bounds = array<i64: 128, 256>}, {pipeline_mode = #tpu.pipeline_mode<synchronous>, transform_indices = @transform_2, window_bounds = array<i64: 1, 256>}, {pipeline_mode = #tpu.pipeline_mode<synchronous>, transform_indices = @transform_3, window_bounds = array<i64: 256, 128>}, {pipeline_mode = #tpu.pipeline_mode<synchronous>, transform_indices = @transform_4, window_bounds = array<i64: 1, 128>}, {transform_indices = @transform_5, window_bounds = array<i64: 32, 128>}]} {
    %c0 = arith.constant 0 : index
    %c0_0 = arith.constant 0 : index
    %0 = vector.load %arg1[%c0, %c0_0] : memref<32x128xf32, #tpu.memory_space<vmem>>, vector<32x128xf32>
    %c0_1 = arith.constant 0 : index
    %c0_2 = arith.constant 0 : index
    %1 = vector.load %arg2[%c0_1, %c0_2] : memref<128x256xf32, #tpu.memory_space<vmem>>, vector<128x256xf32>
    %cst = arith.constant dense<0.000000e+00> : vector<32x256xf32>
    %2 = tpu.matmul %0, %1, %cst {dimension_numbers = #tpu.dot_dimension_numbers<[1], [0], [0], [1], [0, 0, 1, 1], [], []>} : vector<32x128xf32>, vector<128x256xf32>, vector<32x256xf32> -> vector<32x256xf32>
    %c0_3 = arith.constant 0 : index
    %c0_4 = arith.constant 0 : index
    %3 = vector.load %arg3[%c0_3, %c0_4] : memref<1x256xf32, #tpu.memory_space<vmem>>, vector<1x256xf32>
    %4 = vector.broadcast %3 : vector<1x256xf32> to vector<32x256xf32>
    %5 = arith.addf %2, %4 : vector<32x256xf32>
    %6 = math.tanh %5 : vector<32x256xf32>
    %c0_5 = arith.constant 0 : index
    %c0_6 = arith.constant 0 : index
    %7 = vector.load %arg4[%c0_5, %c0_6] : memref<256x128xf32, #tpu.memory_space<vmem>>, vector<256x128xf32>
    %cst_7 = arith.constant dense<0.000000e+00> : vector<32x128xf32>
    %8 = tpu.matmul %6, %7, %cst_7 {dimension_numbers = #tpu.dot_dimension_numbers<[1], [0], [0], [1], [0, 0, 1, 1], [], []>} : vector<32x256xf32>, vector<256x128xf32>, vector<32x128xf32> -> vector<32x128xf32>
    %c0_8 = arith.constant 0 : index
    %c0_9 = arith.constant 0 : index
    %9 = vector.load %arg5[%c0_8, %c0_9] : memref<1x128xf32, #tpu.memory_space<vmem>>, vector<1x128xf32>
    %10 = vector.broadcast %9 : vector<1x128xf32> to vector<32x128xf32>
    %11 = arith.addf %8, %10 : vector<32x128xf32>
    %c0_10 = arith.constant 0 : index
    %c0_11 = arith.constant 0 : index
    %12 = vector.load %arg6[%c0_10, %c0_11] : memref<32x128xf32, #tpu.memory_space<vmem>>, vector<32x128xf32>
    tpu.vector_store %arg6[%c0_10, %c0_11], %11 {strides = array<i32>} : memref<32x128xf32, #tpu.memory_space<vmem>>, vector<32x128xf32>,
    return
  }
  func.func @transform_0(%arg0: i32) -> (i32, i32) {
    %c0_i32 = arith.constant 0 : i32
    %c0_i32_0 = arith.constant 0 : i32
    return %arg0, %c0_i32 : i32, i32
  }
  func.func @transform_1(%arg0: i32) -> (i32, i32) {
    %c0_i32 = arith.constant 0 : i32
    %c0_i32_0 = arith.constant 0 : i32
    %c0_i32_1 = arith.constant 0 : i32
    return %c0_i32, %c0_i32_0 : i32, i32
  }
  func.func @transform_2(%arg0: i32) -> (i32, i32) {
    %c0_i32 = arith.constant 0 : i32
    %c0_i32_0 = arith.constant 0 : i32
    %c0_i32_1 = arith.constant 0 : i32
    return %c0_i32, %c0_i32_0 : i32, i32
  }
  func.func @transform_3(%arg0: i32) -> (i32, i32) {
    %c0_i32 = arith.constant 0 : i32
    %c0_i32_0 = arith.constant 0 : i32
    %c0_i32_1 = arith.constant 0 : i32
    return %c0_i32, %c0_i32_0 : i32, i32
  }
  func.func @transform_4(%arg0: i32) -> (i32, i32) {
    %c0_i32 = arith.constant 0 : i32
    %c0_i32_0 = arith.constant 0 : i32
    %c0_i32_1 = arith.constant 0 : i32
    return %c0_i32, %c0_i32_0 : i32, i32
  }
  func.func @transform_5(%arg0: i32) -> (i32, i32) {
    %c0_i32 = arith.constant 0 : i32
    %c0_i32_0 = arith.constant 0 : i32
    return %arg0, %c0_i32 : i32, i32
  }
}

</mosaic_0001>

<bundles_post_ra>
// kernel: tpu_custom_call.1
= control target key start
LH: loop header
LB: loop body
LE: loop exit
PB: predicated region body
PF: predicated region fallthrough
CT: control target
= control target key end

     0   :  { %10 = vsyncpa [#allocation3], 0  ;;  %s687_s0 = inlined_call_operand.hbm [shape: f32[32,128], index: 0, kind: input, shape index: {}]   ;;  %s688_s1 = inlined_call_operand.hbm [shape: f32[128,256], index: 1, kind: input, shape index: {}]   ;;  %s689_s2 = inlined_call_operand.vmem [shape: f32[1,256], index: 2, kind: input, shape index: {}]   ;;  %s690_s3 = inlined_call_operand.hbm [shape: f32[256,128], index: 3, kind: input, shape index: {}]   ;;  %s691_s4 = inlined_call_operand.vmem [shape: f32[1,128], index: 4, kind: input, shape index: {}]   ;;  %s692_s5 = inlined_call_operand.hbm [shape: f32[32,128], index: 5, kind: output, shape index: {}]  }
   0x1   :  { %11 = vsyncpa [#allocation6], 0 }
   0x2   :  { %12 = vsyncpa [#allocation4], 0  ;;  %s581_s18 = smov [#allocation5]   ;;  %s487_s22 = scalar_lea.hbm %s688_s1, 4096 }
   0x3   :  { %s30_s19 = sshll.u32 %s581_s18, 4  ;;  %p488_p0 = scmp.ne.s32.totalorder %s688_s1, %s487_s22  ;;  %s31_s19 = int_to_ptr.vmem [resolvable:$true] %s30_s19 }
   0x4   :  { %p491_p1 = scmp.lt.u32.totalorder %s487_s22, %s688_s1 }
   0x6   :  { %p493_p2 = pnand %p491_p1, %p488_p0 }
   0x8   :  { %496 = shalt.err (!%p493_p2)
}
   0x9   :  { %s497_s27 = scalar_lea.vmem %s31_s19, 4096  ;;  %p502_p4 = scmp.lt.s32.totalorder %s31_s19, %s31_s19 }
   0xa   :  { %p498_p3 = scmp.ne.s32.totalorder %s31_s19, %s497_s27  ;;  %p503_p5 = scmp.lt.s32.totalorder %s497_s27, %s497_s27 }
   0xc   :  { %p504_p6 = por %p503_p5, %p502_p4 }
   0xe   :  { %p505_p7 = pnand %p504_p6, %p498_p3 }
  0x10   :  { %508 = shalt.err (!%p505_p7)
}
  0x11   :  { %s582_s28 = smov 256   ;;  %s583_s29 = smov 16  }
  0x12   :  { %36 = dma.hbm_to_vmem [thread:$0]  %s688_s1, 4096, %s31_s19, [#allocation6], %s582_s28, %s582_s28, %s583_s29  }
  0x13   :  { %s584_s7 = smov [#allocation2]   ;;  %s509_s11 = scalar_lea.hbm %s687_s0, 512 }
  0x14   :  { %s18_s8 = sshll.u32 %s584_s7, 4  ;;  %p510_p8 = scmp.ne.s32.totalorder %s687_s0, %s509_s11  ;;  %s19_s8 = int_to_ptr.vmem [resolvable:$true] %s18_s8 }
  0x15   :  { %p513_p9 = scmp.lt.u32.totalorder %s509_s11, %s687_s0 }
  0x17   :  { %p515_p10 = pnand %p513_p9, %p510_p8 }
  0x19   :  { %518 = shalt.err (!%p515_p10)
}
  0x1a   :  { %s519_s16 = scalar_lea.vmem %s19_s8, 512  ;;  %p524_p12 = scmp.lt.s32.totalorder %s19_s8, %s19_s8 }
  0x1b   :  { %p520_p11 = scmp.ne.s32.totalorder %s19_s8, %s519_s16  ;;  %p525_p13 = scmp.lt.s32.totalorder %s519_s16, %s519_s16 }
  0x1d   :  { %p526_p0 = por %p525_p13, %p524_p12 }
  0x1f   :  { %p527_p1 = pnand %p526_p0, %p520_p11 }
  0x21   :  { %530 = shalt.err (!%p527_p1)
}
  0x22   :  { %s585_s1 = smov 128   ;;  %s586_s17 = smov 8  }
  0x23   :  { %24 = dma.hbm_to_vmem [thread:$0]  %s687_s0, 512, %s19_s8, [#allocation3], %s585_s1, %s585_s1, %s586_s17  }
  0x24   :  { %s587_s20 = smov [#allocation7]   ;;  %s531_s24 = scalar_lea.hbm %s690_s3, 4096 }
  0x25   :  { %s44_s21 = sshll.u32 %s587_s20, 4  ;;  %p532_p2 = scmp.ne.s32.totalorder %s690_s3, %s531_s24  ;;  %s45_s21 = int_to_ptr.vmem [resolvable:$true] %s44_s21 }
  0x26   :  { %p535_p3 = scmp.lt.u32.totalorder %s531_s24, %s690_s3 }
  0x28   :  { %p537_p4 = pnand %p535_p3, %p532_p2 }
  0x2a   :  { %540 = shalt.err (!%p537_p4)
}
  0x2b   :  { %s541_s29 = scalar_lea.vmem %s45_s21, 4096  ;;  %p546_p6 = scmp.lt.s32.totalorder %s45_s21, %s45_s21 }
  0x2c   :  { %p542_p5 = scmp.ne.s32.totalorder %s45_s21, %s541_s29  ;;  %p547_p7 = scmp.lt.s32.totalorder %s541_s29, %s541_s29 }
  0x2e   :  { %p548_p8 = por %p547_p7, %p546_p6 }
  0x30   :  { %p549_p9 = pnand %p548_p8, %p542_p5 }
  0x32   :  { %552 = shalt.err (!%p549_p9)
}
  0x33   :  { %50 = dma.hbm_to_vmem [thread:$0]  %s690_s3, 4096, %s45_s21, [#allocation6], %s585_s1, %s585_s1, %s586_s17  }
  0x34   :  { %575 = dma.done.wait [#allocation3], 512  }
  0x35   :  { %576 = vsyncadd [#allocation3], 4294966784 }
  0x36   :  { %577 = dma.done.wait [#allocation6], 8192  }
  0x37   :  { %578 = vsyncadd [#allocation6], 4294959104  ;;  %v588_v0 = vmov 0.0   ;;  %v67_v1 = vld [vmem:[#allocation5 + $0x8] sm:$0xff]  ;;  %v69_v2 = vld [vmem:[#allocation5 + $0x18] sm:$0xff]  ;;  %s589_s8 = smov [#allocation8]  }
  0x38   :  { %174 = vmatprep.mubr.f32.mxu0 %v588_v0  ;;  %v66_v3 = vld [vmem:[#allocation5] sm:$0xff]  ;;  %v398_v4 = vpack.c.bf16 %v69_v2, %v67_v1  ;;  %v68_v5 = vld [vmem:[#allocation5 + $0x10] sm:$0xff]  ;;  %v71_v6 = vld [vmem:[#allocation5 + $0x28] sm:$0xff]  ;;  %s340_s9 = sshll.u32 %s589_s8, 4  ;;  %s341_s9 = int_to_ptr.vmem [resolvable:$true] %s340_s9 }
  0x39   :  { %v73_v7 = vld [vmem:[#allocation5 + $0x38] sm:$0xff]  ;;  %v400_v8 = vpack.c.bf16 %v68_v5, %v66_v3  ;;  %v70_v10 = vld [vmem:[#allocation5 + $0x20] sm:$0xff]  ;;  %v72_v11 = vld [vmem:[#allocation5 + $0x30] sm:$0xff]  ;;  %p558_p11 = scmp.lt.s32.totalorder %s341_s9, %s341_s9 }
  0x3a   :  { %v402_v9 = vpack.c.bf16 %v73_v7, %v71_v6  ;;  %v75_v12 = vld [vmem:[#allocation5 + $0x48] sm:$0xff]  ;;  %399 = vmatprep.subr.bf16.mxu0 %v398_v4  ;;  %v77_v13 = vld [vmem:[#allocation5 + $0x58] sm:$0xff]  ;;  %v404_v14 = vpack.c.bf16 %v72_v11, %v70_v10  ;;  %v74_v16 = vld [vmem:[#allocation5 + $0x40] sm:$0xff] }
  0x3b   :  { %401 = vmatpush1.bf16.msra.mxu0 %v400_v8  ;;  %v406_v15 = vpack.c.bf16 %v77_v13, %v75_v12  ;;  %v76_v17 = vld [vmem:[#allocation5 + $0x50] sm:$0xff]  ;;  %v79_v18 = vld [vmem:[#allocation5 + $0x68] sm:$0xff]  ;;  %v81_v19 = vld [vmem:[#allocation5 + $0x78] sm:$0xff] }
  0x3c   :  { %403 = vmatprep.subr.bf16.mxu0 %v402_v9  ;;  %v408_v20 = vpack.c.bf16 %v76_v17, %v74_v16  ;;  %v410_v21 = vpack.c.bf16 %v81_v19, %v79_v18  ;;  %v78_v22 = vld [vmem:[#allocation5 + $0x60] sm:$0xff]  ;;  %v80_v23 = vld [vmem:[#allocation5 + $0x70] sm:$0xff]  ;;  %v83_v24 = vld [vmem:[#allocation5 + $0x88] sm:$0xff] }
  0x3d   :  { %v85_v25 = vld [vmem:[#allocation5 + $0x98] sm:$0xff]  ;;  %v82_v26 = vld [vmem:[#allocation5 + $0x80] sm:$0xff]  ;;  %v84_v27 = vld [vmem:[#allocation5 + $0x90] sm:$0xff]  ;;  %v412_v28 = vpack.c.bf16 %v80_v23, %v78_v22 }
  0x3e   :  { %v87_v29 = vld [vmem:[#allocation5 + $0xa8] sm:$0xff]  ;;  %v89_v30 = vld [vmem:[#allocation5 + $0xb8] sm:$0xff]  ;;  %v223_v31 = vld [vmem:[#allocation7 + $0x80] sm:$0xff]  ;;  %v414_v34 = vpack.c.bf16 %v85_v25, %v83_v24  ;;  %v416_v45 = vpack.c.bf16 %v84_v27, %v82_v26 }
  0x3f   :  { %405 = vmatpush1.bf16.msra.mxu0 %v404_v14  ;;  %v224_v32 = vld [vmem:[#allocation7 + $0x88] sm:$0xff]  ;;  %v207_v33 = vld [vmem:[#allocation7] sm:$0xff]  ;;  %v225_v37 = vld [vmem:[#allocation7 + $0x90] sm:$0xff]  ;;  %v418_v49 = vpack.c.bf16 %v89_v30, %v87_v29 }
  0x40   :  { %407 = vmatprep.subr.bf16.mxu0 %v406_v15  ;;  %v430_v35 = vpack.c.bf16 %v224_v32, %v223_v31  ;;  %v208_v36 = vld [vmem:[#allocation7 + $0x8] sm:$0xff]  ;;  %v226_v38 = vld [vmem:[#allocation7 + $0x98] sm:$0xff]  ;;  %v209_v41 = vld [vmem:[#allocation7 + $0x10] sm:$0xff] }
  0x41   :  { %v432_v39 = vpack.c.bf16 %v208_v36, %v207_v33  ;;  %v434_v40 = vpack.c.bf16 %v226_v38, %v225_v37  ;;  %v210_v42 = vld [vmem:[#allocation7 + $0x18] sm:$0xff]  ;;  %v227_v43 = vld [vmem:[#allocation7 + $0xa0] sm:$0xff]  ;;  %v228_v44 = vld [vmem:[#allocation7 + $0xa8] sm:$0xff]  ;;  %v100_v37 = vlaneseq }
  0x42   :  { %431 = vmatprep.subr.bf16.mxu1 %v430_v35  ;;  %v86_v46 = vld [vmem:[#allocation5 + $0xa0] sm:$0xff]  ;;  %v88_v47 = vld [vmem:[#allocation5 + $0xb0] sm:$0xff]  ;;  %v436_v48 = vpack.c.bf16 %v210_v42, %v209_v41  ;;  %v91_v50 = vld [vmem:[#allocation5 + $0xc8] sm:$0xff]  ;;  %v438_v51 = vpack.c.bf16 %v228_v44, %v227_v43 }
  0x43   :  { %409 = vmatpush1.bf16.msra.mxu0 %v408_v20  ;;  %433 = vmatpush3.bf16.msra.mxu1 %v432_v39  ;;  %v211_v52 = vld [vmem:[#allocation7 + $0x20] sm:$0xff]  ;;  %v212_v53 = vld [vmem:[#allocation7 + $0x28] sm:$0xff]  ;;  %v93_v54 = vld [vmem:[#allocation5 + $0xd8] sm:$0xff]  ;;  %v420_v57 = vpack.c.bf16 %v88_v47, %v86_v46  ;;  %v101_v38 = vshrl.u32 %v100_v37, 7 }
  0x44   :  { %411 = vmatprep.subr.bf16.mxu0 %v410_v21  ;;  %435 = vmatprep.subr.bf16.mxu1 %v434_v40  ;;  %v229_v55 = vld [vmem:[#allocation7 + $0xb0] sm:$0xff]  ;;  %v230_v56 = vld [vmem:[#allocation7 + $0xb8] sm:$0xff]  ;;  %v90_v58 = vld [vmem:[#allocation5 + $0xc0] sm:$0xff]  ;;  %v440_v59 = vpack.c.bf16 %v212_v53, %v211_v52  ;;  %v422_v60 = vpack.c.bf16 %v93_v54, %v91_v50 }
  0x45   :  { %v92_v61 = vld [vmem:[#allocation5 + $0xd0] sm:$0xff]  ;;  %v442_v62 = vpack.c.bf16 %v230_v56, %v229_v55  ;;  %v214_v1 = vld [vmem:[#allocation7 + $0x38] sm:$0xff]  ;;  %v95_v2 = vld [vmem:[#allocation5 + $0xe8] sm:$0xff]  ;;  %v102_v39 = vsub.s32 0, %v101_v38  ;;  %v106_v41 = vsub.s32 1, %v101_v38 }
  0x46   :  { %v213_v63 = vld [vmem:[#allocation7 + $0x30] sm:$0xff]  ;;  %v97_v3 = vld [vmem:[#allocation5 + $0xf8] sm:$0xff]  ;;  %v424_v4 = vpack.c.bf16 %v92_v61, %v90_v58  ;;  %v94_v7 = vld [vmem:[#allocation5 + $0xe0] sm:$0xff] }
  0x47   :  { %413 = vmatpush1.bf16.msra.mxu0 %v412_v28  ;;  %437 = vmatpush3.bf16.msra.mxu1 %v436_v48  ;;  %v444_v5 = vpack.c.bf16 %v214_v1, %v213_v63  ;;  %v426_v6 = vpack.c.bf16 %v97_v3, %v95_v2  ;;  %v96_v8 = vld [vmem:[#allocation5 + $0xf0] sm:$0xff]  ;;  %v62_v10 = vld [vmem:[#allocation2] sm:$0xff]  ;;  %v63_v11 = vld [vmem:[#allocation2 + $0x8] sm:$0xff] }
  0x48   :  { %415 = vmatprep.subr.bf16.mxu0 %v414_v34  ;;  %439 = vmatprep.subr.bf16.mxu1 %v438_v51  ;;  %v428_v9 = vpack.c.bf16 %v96_v8, %v94_v7  ;;  %v64_v12 = vld [vmem:[#allocation2 + $0x10] sm:$0xff]  ;;  %v65_v13 = vld [vmem:[#allocation2 + $0x18] sm:$0xff]  ;;  %v231_v14 = vld [vmem:[#allocation7 + $0xc0] sm:$0xff] }
  0x49   :  { %v232_v15 = vld [vmem:[#allocation7 + $0xc8] sm:$0xff]  ;;  %v215_v17 = vld [vmem:[#allocation7 + $0x40] sm:$0xff]  ;;  %v233_v20 = vld [vmem:[#allocation7 + $0xd0] sm:$0xff] }
  0x4a   :  { %v446_v16 = vpack.c.bf16 %v232_v15, %v231_v14  ;;  %v216_v18 = vld [vmem:[#allocation7 + $0x48] sm:$0xff]  ;;  %v234_v21 = vld [vmem:[#allocation7 + $0xd8] sm:$0xff]  ;;  %v217_v23 = vld [vmem:[#allocation7 + $0x50] sm:$0xff] }
  0x4b   :  { %417 = vmatpush1.bf16.msra.mxu0 %v416_v45  ;;  %441 = vmatpush3.bf16.msra.mxu1 %v440_v59  ;;  %v448_v19 = vpack.c.bf16 %v216_v18, %v215_v17  ;;  %v450_v22 = vpack.c.bf16 %v234_v21, %v233_v20  ;;  %v218_v24 = vld [vmem:[#allocation7 + $0x58] sm:$0xff]  ;;  %v235_v26 = vld [vmem:[#allocation7 + $0xe0] sm:$0xff]  ;;  %v220_v29 = vld [vmem:[#allocation7 + $0x68] sm:$0xff] }
  0x4c   :  { %419 = vmatprep.subr.bf16.mxu0 %v418_v49  ;;  %443 = vmatprep.subr.bf16.mxu1 %v442_v62  ;;  %v452_v25 = vpack.c.bf16 %v218_v24, %v217_v23  ;;  %v219_v28 = vld [vmem:[#allocation7 + $0x60] sm:$0xff]  ;;  %v237_v31 = vld [vmem:[#allocation7 + $0xf0] sm:$0xff]  ;;  %v238_v32 = vld [vmem:[#allocation7 + $0xf8] sm:$0xff] }
  0x4d   :  { %v456_v30 = vpack.c.bf16 %v220_v29, %v219_v28  ;;  %v458_v33 = vpack.c.bf16 %v238_v32, %v237_v31  ;;  %v221_v34 = vld [vmem:[#allocation7 + $0x70] sm:$0xff]  ;;  %v222_v35 = vld [vmem:[#allocation7 + $0x78] sm:$0xff]  ;;  %v98_v40 = vld [vmem:[%s689_s2] sm:$0x3] }
  0x4e   :  { %v460_v36 = vpack.c.bf16 %v222_v35, %v221_v34  ;;  %v103_v42 = vrot.slane %v98_v40, %v102_v39  ;;  %v107_v43 = vrot.slane %v98_v40, %v106_v41 }
  0x4f   :  { %421 = vmatpush1.bf16.msra.mxu0 %v420_v57  ;;  %445 = vmatpush3.bf16.msra.mxu1 %v444_v5 }
  0x50   :  { %423 = vmatprep.subr.bf16.mxu0 %v422_v60  ;;  %447 = vmatprep.subr.bf16.mxu1 %v446_v16 }
  0x53   :  { %425 = vmatpush1.bf16.msra.mxu0 %v424_v4  ;;  %449 = vmatpush3.bf16.msra.mxu1 %v448_v19 }
  0x54   :  { %427 = vmatprep.subr.bf16.mxu0 %v426_v6  ;;  %451 = vmatprep.subr.bf16.mxu1 %v450_v22  ;;  %v353_v6 = vld [vmem:[%s691_s4] ss:$0 sm:$0xff]  ;;  %s553_s4 = scalar_lea.vmem %s341_s9, 512 }
  0x55   :  { %p554_p10 = scmp.ne.s32.totalorder %s341_s9, %s553_s4  ;;  %p559_p12 = scmp.lt.s32.totalorder %s553_s4, %s553_s4 }
  0x57   :  { %429 = vmatpush1.bf16.msra.mxu0 %v428_v9  ;;  %453 = vmatpush3.bf16.msra.mxu1 %v452_v25  ;;  %p560_p13 = por %p559_p12, %p558_p11 }
  0x59   :  { %p561_p0 = pnand %p560_p13, %p554_p10 }
  0x5a   :  { %175 = vmatmul.mubr.f32.vlgmr.msra.gmra.mrb[0].mxu0 %v62_v10 }
  0x5b   :  { %180 = vmatprep.mubr.f32.mxu0 %v588_v0 }
  0x5e   :  { %181 = vmatmul.mubr.f32.gmra.mrb[2].mxu0 %v63_v11 }
  0x5f   :  { %186 = vmatprep.mubr.f32.mxu0 %v588_v0 }
  0x62   :  { %187 = vmatmul.mubr.f32.gmra.mrb[4].mxu0 %v64_v12 }
  0x63   :  { %192 = vmatprep.mubr.f32.mxu0 %v588_v0  ;;  %v236_v0 = vld [vmem:[#allocation7 + $0xe8] sm:$0xff] }
  0x64   :  { %v454_v27 = vpack.c.bf16 %v236_v0, %v235_v26 }
  0x66   :  { %193 = vmatmul.mubr.f32.gmra.mrb[6].mxu0 %v65_v13  ;;  %455 = vmatprep.subr.bf16.mxu1 %v454_v27 }
  0x67   :  { %457 = vmatpush3.bf16.msra.mxu1 %v456_v30 }
  0x68   :  { %459 = vmatprep.subr.bf16.mxu1 %v458_v33 }
  0x6b   :  { %461 = vmatpush3.bf16.msra.mxu1 %v460_v36 }
 0x12d   :  { %v176_v44 = vpop.f32.mrb[0].mxu0 }
 0x12e   :  { %v177_v45 = vadd.f32 %v176_v44, %v103_v42  ;;  %v178_v46 = vpop.f32.mrb[1].mxu0 }
 0x12f   :  { %v179_v47 = vadd.f32 %v178_v46, %v107_v43 }
 0x131   :  { %471 = vtanh.f32 %v179_v47  ;;  %v182_v48 = vpop.f32.mrb[2].mxu0 }
 0x132   :  { %473 = vtanh.f32 %v177_v45  ;;  %v183_v49 = vadd.f32 %v182_v48, %v103_v42  ;;  %v184_v50 = vpop.f32.mrb[3].mxu0 }
 0x133   :  { %v185_v51 = vadd.f32 %v184_v50, %v107_v43 }
 0x135   :  { %475 = vtanh.f32 %v185_v51  ;;  %v188_v52 = vpop.f32.mrb[4].mxu0 }
 0x136   :  { %477 = vtanh.f32 %v183_v49  ;;  %v189_v53 = vadd.f32 %v188_v52, %v103_v42  ;;  %v190_v54 = vpop.f32.mrb[5].mxu0 }
 0x137   :  { %v191_v55 = vadd.f32 %v190_v54, %v107_v43 }
 0x139   :  { %479 = vtanh.f32 %v191_v55  ;;  %v194_v56 = vpop.f32.mrb[6].mxu0 }
 0x13a   :  { %481 = vtanh.f32 %v189_v53  ;;  %v195_v57 = vadd.f32 %v194_v56, %v103_v42  ;;  %v196_v58 = vpop.f32.mrb[7].mxu0 }
 0x13b   :  { %v472_v59 = vpop.eup %471  ;;  %v197_v60 = vadd.f32 %v196_v58, %v107_v43 }
 0x13c   :  { %v474_v61 = vpop.eup %473  ;;  %310 = vmatprep.mubr.f32.mxu1 %v472_v59 }
 0x13d   :  { %483 = vtanh.f32 %v197_v60  ;;  %311 = vmatmul.mubr.f32.vlgmr.msra.gmra.mrb[0].mxu1 %v474_v61 }
 0x13e   :  { %485 = vtanh.f32 %v195_v57 }
 0x13f   :  { %v476_v62 = vpop.eup %475 }
 0x140   :  { %v478_v63 = vpop.eup %477  ;;  %315 = vmatprep.mubr.f32.mxu1 %v476_v62 }
 0x141   :  { %316 = vmatmul.mubr.f32.gmra.mrb[2].mxu1 %v478_v63 }
 0x143   :  { %v480_v1 = vpop.eup %479 }
 0x144   :  { %v482_v2 = vpop.eup %481  ;;  %320 = vmatprep.mubr.f32.mxu1 %v480_v1 }
 0x145   :  { %321 = vmatmul.mubr.f32.gmra.mrb[4].mxu1 %v482_v2 }
 0x147   :  { %v484_v3 = vpop.eup %483 }
 0x148   :  { %v486_v4 = vpop.eup %485  ;;  %325 = vmatprep.mubr.f32.mxu1 %v484_v3 }
 0x149   :  { %326 = vmatmul.mubr.f32.gmra.mrb[6].mxu1 %v486_v4 }
 0x210   :  { %v386_v5 = vpop.f32.mrb[0].mxu1 }
 0x211   :  { %v387_v7 = vpop.f32.mrb[1].mxu1 }
 0x212   :  { %v388_v8 = vadd.f32 %v387_v7, %v386_v5 }
 0x214   :  { %v313_v9 = vadd.f32 %v388_v8, %v353_v6  ;;  %v389_v10 = vpop.f32.mrb[2].mxu1 }
 0x215   :  { %v390_v11 = vpop.f32.mrb[3].mxu1 }
 0x216   :  { %331 = vst [vmem:[#allocation8] sm:$0xff] %v313_v9  ;;  %v391_v12 = vadd.f32 %v390_v11, %v389_v10 }
 0x218   :  { %v318_v13 = vadd.f32 %v391_v12, %v353_v6  ;;  %v392_v14 = vpop.f32.mrb[4].mxu1 }
 0x219   :  { %v393_v15 = vpop.f32.mrb[5].mxu1 }
 0x21a   :  { %332 = vst [vmem:[#allocation8 + $0x8] sm:$0xff] %v318_v13  ;;  %v394_v16 = vadd.f32 %v393_v15, %v392_v14 }
 0x21c   :  { %v323_v17 = vadd.f32 %v394_v16, %v353_v6  ;;  %v395_v18 = vpop.f32.mrb[6].mxu1 }
 0x21d   :  { %v396_v19 = vpop.f32.mrb[7].mxu1 }
 0x21e   :  { %333 = vst [vmem:[#allocation8 + $0x10] sm:$0xff] %v323_v17  ;;  %v397_v20 = vadd.f32 %v396_v19, %v395_v18 }
 0x220   :  { %v328_v21 = vadd.f32 %v397_v20, %v353_v6 }
 0x222   :  { %334 = vst [vmem:[#allocation8 + $0x18] sm:$0xff] %v328_v21 }
 0x223   :  { %564 = shalt.err (!%p561_p0)
}
 0x224   :  { %s565_s12 = scalar_lea.hbm %s692_s5, 512 }
 0x225   :  { %p566_p1 = scmp.ne.s32.totalorder %s692_s5, %s565_s12  ;;  %p569_p2 = scmp.lt.u32.totalorder %s565_s12, %s692_s5 }
 0x227   :  { %p571_p3 = pnand %p569_p2, %p566_p1 }
 0x229   :  { %574 = shalt.err (!%p571_p3)
}
 0x22a   :  { %346 = dma.vmem_to_hbm [thread:$0]  %s341_s9, 512, %s692_s5, [#allocation4], %s585_s1, %s585_s1, %s586_s17  }
 0x22b   :  { %579 = dma.done.wait [#allocation4], 512  }
 0x22c   :  { %580 = vsyncadd [#allocation4], 4294966784 }
 0x22d   :  { %350 = vsyncpa [#allocation3], 1 }
 0x22e   :  { %351 = vsyncpa [#allocation6], 1 }
 0x22f   :  { %352 = vsyncpa [#allocation4], 1 }

</bundles_post_ra>
